<compile_context>
chip_gen: v7x
topology: tpu7x:2x2x1
jax: 0.10.0
libtpu: 0.0.40
codegen_flags: <defaults>
</compile_context>

<pallas_src>
import functools

import jax
import jax.numpy as jnp
from jax.experimental import pallas as pl
from jax.experimental.pallas import tpu as pltpu


def layernorm_kernel(x_ref, a_ref, b_ref, o_ref, *, eps, fold, features):
    x = x_ref[...].astype(jnp.float32)                  # (TR, fold*F), lane-dense
    tr = x.shape[0]
    if fold > 1:
        xs = x.reshape(tr, fold, features)              # segmented view
    else:
        xs = x
    mean = jnp.mean(xs, axis=-1, keepdims=True)          # per original row
    xc = xs - mean
    # PyTorch x.std() uses Bessel's correction (divisor N-1)
    var = jnp.sum(xc * xc, axis=-1, keepdims=True) * jnp.float32(1.0 / (features - 1))
    std = jnp.sqrt(var)
    # eps is added to std (not inside the sqrt), matching the reference module.
    inv = 1.0 / (std + jnp.float32(eps))                 # exact; per row only, hidden under DMA
    y = xc * inv
    if fold > 1:
        y = y.reshape(tr, fold * features)
    out = y * a_ref[...].astype(jnp.float32) + b_ref[...].astype(jnp.float32)
    o_ref[...] = out.astype(o_ref.dtype)


def _vmem_capacity_bytes():
    try:
        return int(pltpu.get_tpu_info().vmem_capacity_bytes)
    except Exception:
        return 64 * 1024 * 1024      # conservative: v7x per-TensorCore VMEM


def layer_norm(x, a_2, b_2, *, eps=1e-6, row_tile=None):
    orig_shape = x.shape
    features = orig_shape[-1]
    assert features >= 2, "unbiased std needs at least 2 features"
    rows = 1
    for d in orig_shape[:-1]:
        rows *= d

    # --- lane-density fold: pack k rows into the 128-lane dim when F < 128 ---
    fold = 1
    if features < 128 and 128 % features == 0:
        k = 128 // features
        if rows % k == 0:
            fold = k
    width = fold * features
    rows_f = rows // fold

    x2 = x.reshape(rows_f, width)
    a2 = jnp.tile(a_2.reshape(1, features), (1, fold))
    b2 = jnp.tile(b_2.reshape(1, features), (1, fold))

    # --- dtype-aware sublane multiple (8 for f32, 16 for bf16, 32 for int8) ---
    itemsize = jnp.dtype(x.dtype).itemsize
    mult = max(8, 8 * 4 // itemsize)

    # --- VMEM budget derived per chip generation ---
    cap = _vmem_capacity_bytes()
    if row_tile is None:
        # 2x double-buffered input block + 2x output block (input dtype) plus
        # ~3 f32 temporaries (x_f32, xc, normalized out) live inside the body.
        per_row = width * (4 * itemsize + 3 * 4)
        row_tile = max(1, (cap // 2) // per_row)
        # give v7x's two TensorCores at least ~4 blocks to shard on real inputs
        if rows_f >= 4 * mult:
            row_tile = min(row_tile, max(mult, (rows_f // 4) // mult * mult))
    row_tile = min(row_tile, 8192)
    row_tile = max(mult, (row_tile // mult) * mult)
    if row_tile >= rows_f:
        row_tile = rows_f            # single full-extent block (always legal)

    # No wrapper-side padding: Pallas clips the partial last block's stores, and
    # rows are independent so garbage rows read past the end never reach HBM.
    grid = (pl.cdiv(rows_f, row_tile),)

    vmem_limit = int(min(cap * 3 // 4, 96 * 1024 * 1024))

    out = pl.pallas_call(
        functools.partial(layernorm_kernel, eps=eps, fold=fold, features=features),
        out_shape=jax.ShapeDtypeStruct((rows_f, width), x.dtype),
        grid_spec=pltpu.PrefetchScalarGridSpec(
            num_scalar_prefetch=0,
            grid=grid,
            in_specs=[
                pl.BlockSpec((row_tile, width), lambda i: (i, 0)),
                pl.BlockSpec((1, width), lambda i: (0, 0)),
                pl.BlockSpec((1, width), lambda i: (0, 0)),
            ],
            out_specs=pl.BlockSpec((row_tile, width), lambda i: (i, 0)),
        ),
        compiler_params=pltpu.CompilerParams(
            dimension_semantics=("parallel",),   # shards row blocks across TCs on v7x
            vmem_limit_bytes=vmem_limit,
        ),
    )(x2, a2, b2)

    return out.reshape(orig_shape)


if __name__ == "__main__":
    key = jax.random.PRNGKey(0)
    batch, seq, hidden = 2, 8, 32                       # x: (batch, seq, hidden)
    x = jax.random.normal(key, (batch, seq, hidden), dtype=jnp.float32)

    # deterministic parameter init matching nn.Parameter(torch.ones/zeros(features))
    a_2 = jnp.ones((hidden,), dtype=jnp.float32)
    b_2 = jnp.zeros((hidden,), dtype=jnp.float32)

    out = layer_norm(x, a_2, b_2)
    out = jax.block_until_ready(out)

    # reference check (pure JAX, matches the PyTorch module: unbiased std, eps on std)
    mean = jnp.mean(x, axis=-1, keepdims=True)
    std = jnp.sqrt(jnp.sum((x - mean) ** 2, axis=-1, keepdims=True) / (hidden - 1))
    ref = a_2 * (x - mean) / (std + 1e-6) + b_2
    assert jnp.allclose(out, ref, atol=1e-4, rtol=1e-4), "mismatch vs reference"

    print("KERNEL_OK")
</pallas_src>

<mosaic_0001>
module attributes {stable_mosaic.version = 11 : i64} {
  func.func @layernorm_kernel(%arg0: i32, %arg1: memref<4x128xf32, #tpu.memory_space<vmem>>, %arg2: memref<1x128xf32, #tpu.memory_space<vmem>>, %arg3: memref<1x128xf32, #tpu.memory_space<vmem>>, %arg4: memref<4x128xf32, #tpu.memory_space<vmem>>) attributes {dimension_semantics = [#tpu.dimension_semantics<parallel>], iteration_bounds = array<i64: 1>, scalar_prefetch = 0 : i64, scratch_operands = 0 : i64, tpu.core_type = #tpu.core_type<tc>, window_params = [{transform_indices = @transform_0, window_bounds = array<i64: 4, 128>}, {pipeline_mode = #tpu.pipeline_mode<synchronous>, transform_indices = @transform_1, window_bounds = array<i64: 1, 128>}, {pipeline_mode = #tpu.pipeline_mode<synchronous>, transform_indices = @transform_2, window_bounds = array<i64: 1, 128>}, {transform_indices = @transform_3, window_bounds = array<i64: 4, 128>}]} {
    %c0 = arith.constant 0 : index
    %c0_0 = arith.constant 0 : index
    %0 = vector.load %arg1[%c0, %c0_0] : memref<4x128xf32, #tpu.memory_space<vmem>>, vector<4x128xf32>
    %1 = vector.shape_cast %0 : vector<4x128xf32> to vector<4x4x32xf32>
    %cst = arith.constant dense<0.000000e+00> : vector<4x4xf32>
    %2 = vector.multi_reduction <add>, %1, %cst [2] : vector<4x4x32xf32> to vector<4x4xf32>
    %3 = vector.shape_cast %2 : vector<4x4xf32> to vector<4x4x1xf32>
    %cst_1 = arith.constant 3.200000e+01 : f32
    %4 = vector.broadcast %cst_1 : f32 to vector<4x4x1xf32>
    %5 = arith.divf %3, %4 : vector<4x4x1xf32>
    %6 = vector.broadcast %5 : vector<4x4x1xf32> to vector<4x4x32xf32>
    %7 = arith.subf %1, %6 : vector<4x4x32xf32>
    %8 = arith.mulf %7, %7 : vector<4x4x32xf32>
    %cst_2 = arith.constant dense<0.000000e+00> : vector<4x4xf32>
    %9 = vector.multi_reduction <add>, %8, %cst_2 [2] : vector<4x4x32xf32> to vector<4x4xf32>
    %10 = vector.shape_cast %9 : vector<4x4xf32> to vector<4x4x1xf32>
    %cst_3 = arith.constant 0.0322580636 : f32
    %11 = vector.broadcast %cst_3 : f32 to vector<4x4x1xf32>
    %12 = arith.mulf %10, %11 : vector<4x4x1xf32>
    %13 = math.sqrt %12 : vector<4x4x1xf32>
    %cst_4 = arith.constant 9.99999997E-7 : f32
    %14 = vector.broadcast %cst_4 : f32 to vector<4x4x1xf32>
    %15 = arith.addf %13, %14 : vector<4x4x1xf32>
    %cst_5 = arith.constant 1.000000e+00 : f32
    %16 = vector.broadcast %cst_5 : f32 to vector<4x4x1xf32>
    %17 = arith.divf %16, %15 : vector<4x4x1xf32>
    %18 = vector.broadcast %17 : vector<4x4x1xf32> to vector<4x4x32xf32>
    %19 = arith.mulf %7, %18 : vector<4x4x32xf32>
    %20 = vector.shape_cast %19 : vector<4x4x32xf32> to vector<4x128xf32>
    %c0_6 = arith.constant 0 : index
    %c0_7 = arith.constant 0 : index
    %21 = vector.load %arg2[%c0_6, %c0_7] : memref<1x128xf32, #tpu.memory_space<vmem>>, vector<1x128xf32>
    %22 = vector.broadcast %21 : vector<1x128xf32> to vector<4x128xf32>
    %23 = arith.mulf %20, %22 : vector<4x128xf32>
    %c0_8 = arith.constant 0 : index
    %c0_9 = arith.constant 0 : index
    %24 = vector.load %arg3[%c0_8, %c0_9] : memref<1x128xf32, #tpu.memory_space<vmem>>, vector<1x128xf32>
    %25 = vector.broadcast %24 : vector<1x128xf32> to vector<4x128xf32>
    %26 = arith.addf %23, %25 : vector<4x128xf32>
    %c0_10 = arith.constant 0 : index
    %c0_11 = arith.constant 0 : index
    %27 = vector.load %arg4[%c0_10, %c0_11] : memref<4x128xf32, #tpu.memory_space<vmem>>, vector<4x128xf32>
    tpu.vector_store %arg4[%c0_10, %c0_11], %26 {strides = array<i32>} : memref<4x128xf32, #tpu.memory_space<vmem>>, vector<4x128xf32>,
    return
  }
  func.func @transform_0(%arg0: i32) -> (i32, i32) {
    %c0_i32 = arith.constant 0 : i32
    %c0_i32_0 = arith.constant 0 : i32
    return %arg0, %c0_i32 : i32, i32
  }
  func.func @transform_1(%arg0: i32) -> (i32, i32) {
    %c0_i32 = arith.constant 0 : i32
    %c0_i32_0 = arith.constant 0 : i32
    %c0_i32_1 = arith.constant 0 : i32
    return %c0_i32, %c0_i32_0 : i32, i32
  }
  func.func @transform_2(%arg0: i32) -> (i32, i32) {
    %c0_i32 = arith.constant 0 : i32
    %c0_i32_0 = arith.constant 0 : i32
    %c0_i32_1 = arith.constant 0 : i32
    return %c0_i32, %c0_i32_0 : i32, i32
  }
  func.func @transform_3(%arg0: i32) -> (i32, i32) {
    %c0_i32 = arith.constant 0 : i32
    %c0_i32_0 = arith.constant 0 : i32
    return %arg0, %c0_i32 : i32, i32
  }
}

</mosaic_0001>

<bundles_post_ra>
// kernel: tpu_custom_call.1
= control target key start
LH: loop header
LB: loop body
LE: loop exit
PB: predicated region body
PF: predicated region fallthrough
CT: control target
= control target key end

     0   :  { %8 = vsyncpa [#allocation3], 0  ;;  %s424_s0 = inlined_call_operand.hbm [shape: f32[4,128], index: 0, kind: input, shape index: {}]   ;;  %s425_s1 = inlined_call_operand.vmem [shape: f32[1,128], index: 1, kind: input, shape index: {}]   ;;  %s426_s2 = inlined_call_operand.vmem [shape: f32[1,128], index: 2, kind: input, shape index: {}]   ;;  %s427_s3 = inlined_call_operand.hbm [shape: f32[4,128], index: 3, kind: output, shape index: {}]  }
   0x1   :  { %9 = vsyncpa [#allocation4], 0  ;;  %s316_s12 = smov [#allocation2]   ;;  %s268_s16 = scalar_lea.hbm %s424_s0, 64 }
   0x2   :  { %s16_s13 = sshll.u32 %s316_s12, 4  ;;  %p269_p0 = scmp.ne.s32.totalorder %s424_s0, %s268_s16  ;;  %s17_s13 = int_to_ptr.vmem [resolvable:$true] %s16_s13 }
   0x3   :  { %p272_p1 = scmp.lt.u32.totalorder %s268_s16, %s424_s0 }
   0x5   :  { %p274_p2 = pnand %p272_p1, %p269_p0 }
   0x7   :  { %277 = shalt.err (!%p274_p2)
}
   0x8   :  { %s278_s21 = scalar_lea.vmem %s17_s13, 64  ;;  %p283_p4 = scmp.lt.s32.totalorder %s17_s13, %s17_s13 }
   0x9   :  { %p279_p3 = scmp.ne.s32.totalorder %s17_s13, %s278_s21  ;;  %p284_p5 = scmp.lt.s32.totalorder %s278_s21, %s278_s21 }
   0xb   :  { %p285_p6 = por %p284_p5, %p283_p4 }
   0xd   :  { %p286_p7 = pnand %p285_p6, %p279_p3 }
   0xf   :  { %289 = shalt.err (!%p286_p7)
}
  0x10   :  { %19 = dma.hbm_to_vmem [thread:$0]  %s424_s0, 64, %s17_s13, [#allocation3]  }
  0x11   :  { %312 = dma.done.wait [#allocation3], 64  }
  0x12   :  { %313 = vsyncadd [#allocation3], 4294967232  ;;  %v27_v0 = vld [vmem:[#allocation2] sm:$0xf]  ;;  %s317_s24 = smov 32   ;;  %s318_s25 = smov 96   ;;  %v42_v3 = vlaneseq }
  0x13   :  { %35 = vrot.lane.b32.xlu1 %v27_v0, %s317_s24  ;;  %29 = vrot.lane.b32.xlu0 %v27_v0, %s318_s25  ;;  %s319_s26 = smov 64   ;;  %v320_v1 = vmov 1983009808   ;;  %v321_v6 = vmov 1934713408   ;;  %vm72_vm0 = vcmask 257024  }
  0x14   :  { %v40_v2 = vunpack.c.l.s4 %v320_v1  ;;  %v43_v5 = vshrl.u32 %v42_v3, 7  ;;  %v57_v7 = vunpack.c.l.s4 %v321_v6  ;;  %v322_v23 = vmov 0.0   ;;  %s323_s30 = smov [#allocation5]  }
  0x15   :  { %vm204_vm9 = vcmask 261120   ;;  %vm206_vm10 = vcmask 523264   ;;  %vm208_vm11 = vcmask 785408   ;;  %s233_s4 = sshll.u32 %s323_s30, 4  ;;  %s234_s4 = int_to_ptr.vmem [resolvable:$true] %s233_s4 }
  0x16   :  { %v41_v4 = vunpack.c.0.s8 %v40_v2  ;;  %v58_v12 = vunpack.c.0.s8 %v57_v7  ;;  %s290_s5 = scalar_lea.vmem %s234_s4, 64  ;;  %p295_p9 = scmp.lt.s32.totalorder %s234_s4, %s234_s4 }
  0x17   :  { %32 = vrot.lane.b32.xlu0 %v27_v0, %s319_s26  ;;  %p291_p8 = scmp.ne.s32.totalorder %s234_s4, %s290_s5  ;;  %p296_p10 = scmp.lt.s32.totalorder %s290_s5, %s290_s5 }
  0x18   :  { %v359_v10 = vsub.s32 %v41_v4, %v43_v5  ;;  %v362_v16 = vsub.s32 %v58_v12, %v43_v5 }
  0x19   :  { %p297_p11 = por %p296_p10, %p295_p9 }
  0x1b   :  { %p298_p12 = pnand %p297_p11, %p291_p8 }
  0x85   :  { %v36_v8 = vpop.permute.xlu1 %35  ;;  %v30_v9 = vpop.permute.xlu0 %29 }
  0x86   :  { %v46_v11 = vcombine.low %v30_v9, %v36_v8 }
  0x88   :  { %v53_v15 = vrot.slane %v46_v11, %v359_v10 }
  0x89   :  { %v33_v13 = vpop.permute.xlu0 %32 }
  0x8a   :  { %v38_v14 = vcombine.low %v27_v0, %v33_v13 }
  0x8c   :  { %v45_v17 = vrot.slane %v38_v14, %v359_v10 }
  0x8e   :  { %v54_v18 = vcombine.low %v45_v17, %v53_v15  ;;  %v55_v19 = vcombine.high %v45_v17, %v53_v15 }
  0x90   :  { %v69_v20 = vrot.slane %v55_v19, %v362_v16  ;;  %v62_v21 = vrot.slane %v54_v18, %v362_v16 }
  0x92   :  { %v73_v22 = vsel %vm72_vm0, %v62_v21, 0.0  ;;  %v70_v24 = vcombine.high %v62_v21, %v322_v23  ;;  %v71_v25 = vcombine.high %v69_v20, %v322_v23  ;;  %v79_v28 = vsel %vm72_vm0, %v69_v20, 0.0 }
  0x93   :  { %74 = vadd.xlane.f32.xlu1 %v73_v22 }
  0x94   :  { %v76_v26 = vsel %vm72_vm0, %v70_v24, 0.0  ;;  %v82_v27 = vsel %vm72_vm0, %v71_v25, 0.0 }
  0x95   :  { %77 = vadd.xlane.f32.xlu0 %v76_v26 }
  0x97   :  { %83 = vadd.xlane.f32.xlu1 %v82_v27 }
  0x99   :  { %80 = vadd.xlane.f32.xlu0 %v79_v28 }
 0x120   :  { %v75_v29 = vpop.xlane.xlu1 %74 }
 0x121   :  { %v86_v30 = vmul.f32 0.03125, %v75_v29 }
 0x122   :  { %v78_v31 = vpop.xlane.xlu0 %77 }
 0x123   :  { %v373_v32 = vsub.f32 %v62_v21, %v86_v30  ;;  %v87_v33 = vmul.f32 0.03125, %v78_v31 }
 0x124   :  { %v84_v34 = vpop.xlane.xlu1 %83 }
 0x125   :  { %v375_v35 = vsub.f32 %v70_v24, %v87_v33  ;;  %v89_v36 = vmul.f32 0.03125, %v84_v34  ;;  %v94_v37 = vmul.f32 %v373_v32, %v373_v32 }
 0x126   :  { %v81_v38 = vpop.xlane.xlu0 %80 }
 0x127   :  { %v379_v39 = vsub.f32 %v71_v25, %v89_v36  ;;  %v88_v40 = vmul.f32 0.03125, %v81_v38  ;;  %v98_v41 = vsel %vm72_vm0, %v94_v37, 0.0  ;;  %v95_v42 = vmul.f32 %v375_v35, %v375_v35 }
 0x128   :  { %99 = vadd.xlane.f32.xlu0 %v98_v41 }
 0x129   :  { %v384_v43 = vsub.f32 %v69_v20, %v88_v40  ;;  %v101_v44 = vsel %vm72_vm0, %v95_v42, 0.0  ;;  %v97_v45 = vmul.f32 %v379_v39, %v379_v39 }
 0x12a   :  { %102 = vadd.xlane.f32.xlu1 %v101_v44 }
 0x12b   :  { %v96_v46 = vmul.f32 %v384_v43, %v384_v43  ;;  %v107_v47 = vsel %vm72_vm0, %v97_v45, 0.0 }
 0x12d   :  { %v104_v48 = vsel %vm72_vm0, %v96_v46, 0.0 }
 0x12e   :  { %108 = vadd.xlane.f32.xlu1 %v107_v47  ;;  %105 = vadd.xlane.f32.xlu0 %v104_v48 }
 0x1b5   :  { %v100_v49 = vpop.xlane.xlu0 %99 }
 0x1b6   :  { %v110_v50 = vmul.f32 0.032258064, %v100_v49 }
 0x1b7   :  { %v103_v51 = vpop.xlane.xlu1 %102 }
 0x1b8   :  { %252 = vrsqrt.f32 %v110_v50  ;;  %v111_v52 = vmul.f32 0.032258064, %v103_v51  ;;  %vm116_vm1 = vcmp.eq.f32.partialorder %v110_v50, inf  ;;  %v119_v61 = vand.u32 2147483648, %v110_v50 }
 0x1b9   :  { %vm118_vm2 = vcmp.eq.f32.partialorder %v110_v50, 0.0 }
 0x1ba   :  { %254 = vrsqrt.f32 %v111_v52  ;;  %vm123_vm3 = vcmp.eq.f32.partialorder %v111_v52, inf  ;;  %v126_v0 = vand.u32 2147483648, %v111_v52  ;;  %vm125_vm4 = vcmp.eq.f32.partialorder %v111_v52, 0.0 }
 0x1bb   :  { %v109_v53 = vpop.xlane.xlu1 %108  ;;  %v106_v54 = vpop.xlane.xlu0 %105 }
 0x1bc   :  { %v113_v55 = vmul.f32 0.032258064, %v109_v53  ;;  %v112_v56 = vmul.f32 0.032258064, %v106_v54 }
 0x1be   :  { %256 = vrsqrt.f32 %v113_v55  ;;  %vm137_vm5 = vcmp.eq.f32.partialorder %v113_v55, inf  ;;  %v140_v8 = vand.u32 2147483648, %v113_v55  ;;  %vm139_vm6 = vcmp.eq.f32.partialorder %v113_v55, 0.0 }
 0x1bf   :  { %258 = vrsqrt.f32 %v112_v56  ;;  %vm130_vm7 = vcmp.eq.f32.partialorder %v112_v56, inf  ;;  %v133_v12 = vand.u32 2147483648, %v112_v56  ;;  %vm132_vm8 = vcmp.eq.f32.partialorder %v112_v56, 0.0 }
 0x1c2   :  { %v253_v57 = vpop.eup %252 }
 0x1c3   :  { %v115_v58 = vmul.f32 %v253_v57, %v110_v50 }
 0x1c4   :  { %v255_v59 = vpop.eup %254 }
 0x1c5   :  { %v117_v60 = vsel %vm116_vm1, %v110_v50, %v115_v58  ;;  %v122_v62 = vmul.f32 %v255_v59, %v111_v52 }
 0x1c6   :  { %v120_v63 = vsel %vm118_vm2, %v119_v61, %v117_v60 }
 0x1c7   :  { %v124_v2 = vsel %vm123_vm3, %v111_v52, %v122_v62  ;;  %v142_v6 = vadd.f32 1e-06, %v120_v63 }
 0x1c8   :  { %v257_v1 = vpop.eup %256  ;;  %v127_v4 = vsel %vm125_vm4, %v126_v0, %v124_v2 }
 0x1c9   :  { %v259_v3 = vpop.eup %258  ;;  %v136_v5 = vmul.f32 %v257_v1, %v113_v55  ;;  %v143_v7 = vadd.f32 1e-06, %v127_v4 }
 0x1ca   :  { %v129_v9 = vmul.f32 %v259_v3, %v112_v56 }
 0x1cb   :  { %v138_v11 = vsel %vm137_vm5, %v113_v55, %v136_v5  ;;  %260 = vrcp.f32 %v143_v7 }
 0x1cc   :  { %v141_v13 = vsel %vm139_vm6, %v140_v8, %v138_v11  ;;  %v131_v14 = vsel %vm130_vm7, %v112_v56, %v129_v9  ;;  %262 = vrcp.f32 %v142_v6 }
 0x1cd   :  { %v145_v15 = vadd.f32 1e-06, %v141_v13  ;;  %v134_v17 = vsel %vm132_vm8, %v133_v12, %v131_v14 }
 0x1ce   :  { %v144_v18 = vadd.f32 1e-06, %v134_v17 }
 0x1cf   :  { %264 = vrcp.f32 %v145_v15 }
 0x1d0   :  { %266 = vrcp.f32 %v144_v18 }
 0x1d5   :  { %v261_v19 = vpop.eup %260 }
 0x1d6   :  { %v263_v20 = vpop.eup %262  ;;  %v155_v24 = vmul.f32 %v261_v19, %v375_v35 }
 0x1d7   :  { %v154_v26 = vmul.f32 %v263_v20, %v373_v32 }
 0x1d9   :  { %v265_v21 = vpop.eup %264 }
 0x1da   :  { %v267_v22 = vpop.eup %266  ;;  %v157_v25 = vmul.f32 %v265_v21, %v379_v39 }
 0x1db   :  { %v156_v27 = vmul.f32 %v267_v22, %v384_v43  ;;  %v243_v43 = vld [vmem:[%s426_s2] ss:$0 sm:$0xff] }
 0x1dc   :  { %v166_v28 = vcombine.low %v155_v24, %v157_v25 }
 0x1dd   :  { %v158_v29 = vcombine.low %v154_v26, %v156_v27 }
 0x1de   :  { %v173_v30 = vrot.slane %v166_v28, %v359_v10 }
 0x1df   :  { %v165_v31 = vrot.slane %v158_v29, %v359_v10 }
 0x1e1   :  { %v175_v33 = vcombine.high %v165_v31, %v173_v30  ;;  %v174_v34 = vcombine.low %v165_v31, %v173_v30 }
 0x1e3   :  { %v189_v36 = vrot.slane %v175_v33, %v362_v16  ;;  %v182_v37 = vrot.slane %v174_v34, %v362_v16  ;;  %v242_v16 = vld [vmem:[%s425_s1] ss:$0 sm:$0xff] }
 0x1e5   :  { %197 = vrot.lane.b32.xlu1 %v189_v36, %s319_s26  ;;  %v190_v35 = vcombine.high %v182_v37, %v322_v23  ;;  %v191_v32 = vcombine.high %v189_v36, %v322_v23 }
 0x1e7   :  { %193 = vrot.lane.b32.xlu0 %v190_v35, %s317_s24 }
 0x1e9   :  { %201 = vrot.lane.b32.xlu1 %v191_v32, %s318_s25 }
 0x257   :  { %v198_v38 = vpop.permute.xlu1 %197 }
 0x259   :  { %v194_v10 = vpop.permute.xlu0 %193 }
 0x25a   :  { %v205_v39 = vsel %vm204_vm9, %v182_v37, %v194_v10 }
 0x25b   :  { %v202_v40 = vpop.permute.xlu1 %201  ;;  %v207_v41 = vsel %vm206_vm10, %v205_v39, %v198_v38 }
 0x25c   :  { %v209_v42 = vsel %vm208_vm11, %v207_v41, %v202_v40 }
 0x25d   :  { %v217_v23 = vmul.f32 %v242_v16, %v209_v42 }
 0x25f   :  { %v225_v44 = vadd.f32 %v243_v43, %v217_v23 }
 0x261   :  { %226 = vst [vmem:[#allocation5] sm:$0xf] %v225_v44 }
 0x262   :  { %301 = shalt.err (!%p298_p12)
}
 0x263   :  { %s302_s7 = scalar_lea.hbm %s427_s3, 64 }
 0x264   :  { %p303_p13 = scmp.ne.s32.totalorder %s427_s3, %s302_s7  ;;  %p306_p0 = scmp.lt.u32.totalorder %s302_s7, %s427_s3 }
 0x266   :  { %p308_p1 = pnand %p306_p0, %p303_p13 }
 0x268   :  { %311 = shalt.err (!%p308_p1)
}
 0x269   :  { %236 = dma.vmem_to_hbm [thread:$0]  %s234_s4, 64, %s427_s3, [#allocation4]  }
 0x26a   :  { %314 = dma.done.wait [#allocation4], 64  }
 0x26b   :  { %315 = vsyncadd [#allocation4], 4294967232 }
 0x26c   :  { %240 = vsyncpa [#allocation3], 1 }
 0x26d   :  { %241 = vsyncpa [#allocation4], 1 }

</bundles_post_ra>
